<compile_context>
chip_gen: v7x
topology: tpu7x:2x2x1
jax: 0.10.0
libtpu: 0.0.40
codegen_flags: <defaults>
</compile_context>

<pallas_src>
import jax
import jax.numpy as jnp
from jax.experimental import pallas as pl
from jax.experimental.pallas import tpu as pltpu


# ---------------------------------------------------------------------------
# Kernel: fused AvgPool2d(2,2) -> AvgPool2d(2,2) on a flat (TM, W) row block
# ---------------------------------------------------------------------------
def _iter_downsample_kernel(x_ref, pw1_ref, pw2_ref, o1_ref, o2_ref):
    """x_ref: (TM, W) -> o1_ref: (TM//2, W//2), o2_ref: (TM//4, W//4).

    pw1: (W,  W//2)  column-pool matrix, weight 0.25 (H pair-sum already done)
    pw2: (W//2, W//4) same for the second pooling stage.
    """
    tm, _ = x_ref.shape
    m1 = tm // 2
    m2 = tm // 4

    # ---- stage 1: H pair-sum on the VPU (sublane-strided reads), then the
    #      W-direction pool as one MXU matmul (free unit in a mem-bound kernel).
    hsum1 = (x_ref[pl.ds(0, m1, stride=2), :]
             + x_ref[pl.ds(1, m1, stride=2), :])
    x1 = jnp.dot(hsum1, pw1_ref[...], preferred_element_type=jnp.float32)
    o1_ref[...] = x1.astype(o1_ref.dtype)

    # ---- stage 2: identical recipe on x1, read back from the VMEM-resident
    #      output block (no HBM round trip).
    hsum2 = (o1_ref[pl.ds(0, m2, stride=2), :]
             + o1_ref[pl.ds(1, m2, stride=2), :])
    x2 = jnp.dot(hsum2, pw2_ref[...], preferred_element_type=jnp.float32)
    o2_ref[...] = x2.astype(o2_ref.dtype)


# ---------------------------------------------------------------------------
# Wrapper glue
# ---------------------------------------------------------------------------
def _pool_matrix(n_in, weight, dtype):
    """(n_in, n_in//2) matrix P with P[2j, j] = P[2j+1, j] = weight."""
    n_out = n_in // 2
    rows = jnp.arange(n_in)[:, None]
    cols = jnp.arange(n_out)[None, :]
    return jnp.where(rows // 2 == cols, weight, 0.0).astype(dtype)


def _pick_tile(M, W, elt_bytes):
    """Pick (TM, vmem_limit_bytes) with generation-aware VMEM accounting."""
    try:
        vmem_cap = int(pltpu.get_tpu_info().vmem_capacity_bytes)
    except Exception:
        vmem_cap = 128 * 1024 * 1024  # v5e/v6e default if query unavailable
    # Scoped limit we request from the compiler (<=96 MiB on 128 MiB chips,
    # ~48 MiB on v7x's 64 MiB VMEM).
    vmem_limit = min(vmem_cap * 3 // 4, 96 * 1024 * 1024)
    # Target input-block size: big enough to amortize the ~0.35us/step overhead
    # against each chip's HBM bandwidth (~8 MiB v5e/v6e, ~4 MiB v7x).
    target_in = vmem_cap // 16

    W1, W2 = W // 2, W // 4
    pw_bytes = 2 * (W * W1 + W1 * W2) * elt_bytes  # constants, double-buffered

    def step_bytes(tm):
        in_blk = tm * W * elt_bytes
        o1_blk = (tm // 2) * W1 * elt_bytes
        o2_blk = (tm // 4) * W2 * elt_bytes
        inter = (tm // 2) * W * elt_bytes + ((tm // 2) * W1 + (tm // 4) * W2) * 4
        return 2 * (in_blk + o1_blk + o2_blk) + pw_bytes + inter

    # TM must be a multiple of 32 so all three block shapes satisfy the (8,128)
    # rule and row pairs / quads never straddle a tile; TM == M (full extent)
    # is the always-legal fallback for small / awkward M.
    cands = [tm for tm in range(32, M + 1, 32) if M % tm == 0]
    if not cands:
        # TODO(synk): pad M (or use cdiv grids with masked edge blocks) instead
        # of a single full-extent block when M has no multiple-of-32 divisor.
        return M, vmem_limit

    budget = vmem_limit - 4 * 1024 * 1024  # headroom for compiler scratch
    feasible = [tm for tm in cands
                if tm * W * elt_bytes <= target_in and step_bytes(tm) <= budget]
    if not feasible:
        feasible = [cands[0]]  # 32-row block: smallest legal tile
    pipelined = [tm for tm in feasible if M // tm >= 8]
    tm = max(pipelined) if pipelined else max(feasible)
    return tm, vmem_limit


def _ref_avgpool2x2(v):
    """Pure-JAX AvgPool2d(2,2) (NCHW, floors odd dims like PyTorch)."""
    n, c, h, w = v.shape
    v = v[:, :, : (h // 2) * 2, : (w // 2) * 2]
    v = v.reshape(n, c, h // 2, 2, w // 2, 2)
    return v.mean(axis=(3, 5))


def iter_downsample(x_nchw):
    """JAX/Pallas equivalent of Iter_Downsample.forward: returns (x, x1, x2)."""
    N, C, H, W = x_nchw.shape

    if H % 4 != 0 or W % 4 != 0:
        # TODO(synk): the fused Pallas fast path assumes H, W divisible by 4
        # (two exact 2x2 pools); fall back to pure JAX for PyTorch's floor
        # behaviour on odd / non-multiple-of-4 spatial dims.
        x1 = _ref_avgpool2x2(x_nchw)
        x2 = _ref_avgpool2x2(x1)
        return x_nchw, x1, x2

    H1, W1 = H // 2, W // 2
    H2, W2 = H // 4, W // 4
    M = N * C * H
    elt = x_nchw.dtype.itemsize

    TM, vmem_limit = _pick_tile(M, W, elt)
    grid = (M // TM,)

    # 0.25-weighted column-pool matrices (0.5 of H and 0.5 of W folded in).
    pw1 = _pool_matrix(W, 0.25, x_nchw.dtype)    # (W,  W1)
    pw2 = _pool_matrix(W1, 0.25, x_nchw.dtype)   # (W1, W2)

    xf = x_nchw.reshape(M, W)                    # free row-major view

    # TODO(synk): for W < 512 a lane-dense out_spec (flattening H1*W1 into the
    # lane dim) would avoid masked partial stores; skipped here because the
    # in-kernel (m1, w1) -> lane-dense merge needs a relayout check.

    bytes_accessed = (M * W + (M // 2) * W1 + (M // 4) * W2) * elt
    flops = ((M // 2) * W                      # stage-1 row pair adds
             + 2 * (M // 2) * W1 * W           # stage-1 pool matmul
             + (M // 4) * W1                   # stage-2 row pair adds
             + 2 * (M // 4) * W2 * W1)         # stage-2 pool matmul

    x1f, x2f = pl.pallas_call(
        _iter_downsample_kernel,
        grid=grid,
        in_specs=[
            pl.BlockSpec((TM, W), lambda i: (i, 0)),
            pl.BlockSpec((W, W1), lambda i: (0, 0)),
            pl.BlockSpec((W1, W2), lambda i: (0, 0)),
        ],
        out_specs=(
            pl.BlockSpec((TM // 2, W1), lambda i: (i, 0)),
            pl.BlockSpec((TM // 4, W2), lambda i: (i, 0)),
        ),
        out_shape=(
            jax.ShapeDtypeStruct((M // 2, W1), x_nchw.dtype),
            jax.ShapeDtypeStruct((M // 4, W2), x_nchw.dtype),
        ),
        compiler_params=pltpu.CompilerParams(
            dimension_semantics=("parallel",),
            vmem_limit_bytes=vmem_limit,
        ),
        cost_estimate=pl.CostEstimate(
            flops=int(flops), transcendentals=0,
            bytes_accessed=int(bytes_accessed)),
    )(xf, pw1, pw2)

    return (x_nchw,
            x1f.reshape(N, C, H1, W1),
            x2f.reshape(N, C, H2, W2))


# ---------------------------------------------------------------------------
# Self-test
# ---------------------------------------------------------------------------
if __name__ == "__main__":
    key = jax.random.PRNGKey(0)
    N, C, H, W = 2, 4, 16, 16                       # PyTorch-style NCHW input
    x = jax.random.normal(key, (N, C, H, W), jnp.float32)

    out_x, x1, x2 = iter_downsample(x)
    jax.block_until_ready((out_x, x1, x2))

    # Shape / semantics checks against the module definition.
    assert out_x is x                               # x passes through untouched
    assert x1.shape == (N, C, H // 2, W // 2), x1.shape
    assert x2.shape == (N, C, H // 4, W // 4), x2.shape

    r1 = _ref_avgpool2x2(x)
    r2 = _ref_avgpool2x2(r1)
    e1 = float(jnp.max(jnp.abs(x1 - r1)))
    e2 = float(jnp.max(jnp.abs(x2 - r2)))
    assert e1 < 1e-5, f"x1 mismatch vs reference: {e1}"
    assert e2 < 1e-5, f"x2 mismatch vs reference: {e2}"

    print("KERNEL_OK")
</pallas_src>

<mosaic_0001>
module attributes {stable_mosaic.version = 11 : i64} {
  func.func @_iter_downsample_kernel(%arg0: i32, %arg1: memref<128x16xf32, #tpu.memory_space<vmem>>, %arg2: memref<16x8xf32, #tpu.memory_space<vmem>>, %arg3: memref<8x4xf32, #tpu.memory_space<vmem>>, %arg4: memref<64x8xf32, #tpu.memory_space<vmem>>, %arg5: memref<32x4xf32, #tpu.memory_space<vmem>>) attributes {dimension_semantics = [#tpu.dimension_semantics<parallel>], iteration_bounds = array<i64: 1>, scalar_prefetch = 0 : i64, scratch_operands = 0 : i64, tpu.core_type = #tpu.core_type<tc>, window_params = [{transform_indices = @transform_0, window_bounds = array<i64: 128, 16>}, {pipeline_mode = #tpu.pipeline_mode<synchronous>, transform_indices = @transform_1, window_bounds = array<i64: 16, 8>}, {pipeline_mode = #tpu.pipeline_mode<synchronous>, transform_indices = @transform_2, window_bounds = array<i64: 8, 4>}, {transform_indices = @transform_3, window_bounds = array<i64: 64, 8>}, {transform_indices = @transform_4, window_bounds = array<i64: 32, 4>}]} {
    %c0 = arith.constant 0 : index
    %c0_0 = arith.constant 0 : index
    %0 = tpu.strided_load %arg1[%c0, %c0_0] {strides = array<i32: 2, 1>} : memref<128x16xf32, #tpu.memory_space<vmem>>, vector<64x16xf32>
    %c1 = arith.constant 1 : index
    %c0_1 = arith.constant 0 : index
    %1 = tpu.strided_load %arg1[%c1, %c0_1] {strides = array<i32: 2, 1>} : memref<128x16xf32, #tpu.memory_space<vmem>>, vector<64x16xf32>
    %2 = arith.addf %0, %1 : vector<64x16xf32>
    %c0_2 = arith.constant 0 : index
    %c0_3 = arith.constant 0 : index
    %3 = vector.load %arg2[%c0_2, %c0_3] : memref<16x8xf32, #tpu.memory_space<vmem>>, vector<16x8xf32>
    %cst = arith.constant dense<0.000000e+00> : vector<64x8xf32>
    %4 = tpu.matmul %2, %3, %cst {dimension_numbers = #tpu.dot_dimension_numbers<[1], [0], [0], [1], [0, 0, 1, 1], [], []>} : vector<64x16xf32>, vector<16x8xf32>, vector<64x8xf32> -> vector<64x8xf32>
    %c0_4 = arith.constant 0 : index
    %c0_5 = arith.constant 0 : index
    %5 = vector.load %arg4[%c0_4, %c0_5] : memref<64x8xf32, #tpu.memory_space<vmem>>, vector<64x8xf32>
    tpu.vector_store %arg4[%c0_4, %c0_5], %4 {strides = array<i32>} : memref<64x8xf32, #tpu.memory_space<vmem>>, vector<64x8xf32>,
    %c0_6 = arith.constant 0 : index
    %c0_7 = arith.constant 0 : index
    %6 = tpu.strided_load %arg4[%c0_6, %c0_7] {strides = array<i32: 2, 1>} : memref<64x8xf32, #tpu.memory_space<vmem>>, vector<32x8xf32>
    %c1_8 = arith.constant 1 : index
    %c0_9 = arith.constant 0 : index
    %7 = tpu.strided_load %arg4[%c1_8, %c0_9] {strides = array<i32: 2, 1>} : memref<64x8xf32, #tpu.memory_space<vmem>>, vector<32x8xf32>
    %8 = arith.addf %6, %7 : vector<32x8xf32>
    %c0_10 = arith.constant 0 : index
    %c0_11 = arith.constant 0 : index
    %9 = vector.load %arg3[%c0_10, %c0_11] : memref<8x4xf32, #tpu.memory_space<vmem>>, vector<8x4xf32>
    %cst_12 = arith.constant dense<0.000000e+00> : vector<32x4xf32>
    %10 = tpu.matmul %8, %9, %cst_12 {dimension_numbers = #tpu.dot_dimension_numbers<[1], [0], [0], [1], [0, 0, 1, 1], [], []>} : vector<32x8xf32>, vector<8x4xf32>, vector<32x4xf32> -> vector<32x4xf32>
    %c0_13 = arith.constant 0 : index
    %c0_14 = arith.constant 0 : index
    %11 = vector.load %arg5[%c0_13, %c0_14] : memref<32x4xf32, #tpu.memory_space<vmem>>, vector<32x4xf32>
    tpu.vector_store %arg5[%c0_13, %c0_14], %10 {strides = array<i32>} : memref<32x4xf32, #tpu.memory_space<vmem>>, vector<32x4xf32>,
    return
  }
  func.func @transform_0(%arg0: i32) -> (i32, i32) {
    %c0_i32 = arith.constant 0 : i32
    %c0_i32_0 = arith.constant 0 : i32
    return %arg0, %c0_i32 : i32, i32
  }
  func.func @transform_1(%arg0: i32) -> (i32, i32) {
    %c0_i32 = arith.constant 0 : i32
    %c0_i32_0 = arith.constant 0 : i32
    %c0_i32_1 = arith.constant 0 : i32
    return %c0_i32, %c0_i32_0 : i32, i32
  }
  func.func @transform_2(%arg0: i32) -> (i32, i32) {
    %c0_i32 = arith.constant 0 : i32
    %c0_i32_0 = arith.constant 0 : i32
    %c0_i32_1 = arith.constant 0 : i32
    return %c0_i32, %c0_i32_0 : i32, i32
  }
  func.func @transform_3(%arg0: i32) -> (i32, i32) {
    %c0_i32 = arith.constant 0 : i32
    %c0_i32_0 = arith.constant 0 : i32
    return %arg0, %c0_i32 : i32, i32
  }
  func.func @transform_4(%arg0: i32) -> (i32, i32) {
    %c0_i32 = arith.constant 0 : i32
    %c0_i32_0 = arith.constant 0 : i32
    return %arg0, %c0_i32 : i32, i32
  }
}

</mosaic_0001>

<bundles_post_ra>
// kernel: tpu_custom_call.1
= control target key start
LH: loop header
LB: loop body
LE: loop exit
PB: predicated region body
PF: predicated region fallthrough
CT: control target
= control target key end

     0   :  { %10 = vsyncpa [#allocation3], 0  ;;  %s706_s0 = inlined_call_operand.hbm [shape: f32[128,16], index: 0, kind: input, shape index: {}]   ;;  %s707_s1 = inlined_call_operand.hbm [shape: f32[16,8], index: 1, kind: input, shape index: {}]   ;;  %s708_s2 = inlined_call_operand.hbm [shape: f32[8,4], index: 2, kind: input, shape index: {}]   ;;  %s709_s3 = inlined_call_operand.hbm [shape: f32[64,8], index: 3, kind: output, shape index: {0}]   ;;  %s710_s4 = inlined_call_operand.hbm [shape: f32[32,4], index: 4, kind: output, shape index: {1}]  }
   0x1   :  { %11 = vsyncpa [#allocation6], 0 }
   0x2   :  { %12 = vsyncpa [#allocation4], 0 }
   0x3   :  { %13 = vsyncpa [#allocation10], 0  ;;  %s575_s15 = smov [#allocation5]   ;;  %s576_s17 = smov [#allocation2]  }
   0x4   :  { %s31_s16 = sshll.u32 %s575_s15, 4  ;;  %s19_s18 = sshll.u32 %s576_s17, 4  ;;  %s32_s16 = int_to_ptr.vmem [resolvable:$true] %s31_s16  ;;  %s607_s18 = int_to_ptr.vmem [resolvable:$true] %s19_s18 }
   0x5   :  { %s457_s21 = scalar_lea.hbm %s707_s1, 256 }
   0x6   :  { %p458_p0 = scmp.ne.s32.totalorder %s707_s1, %s457_s21  ;;  %p461_p1 = scmp.lt.u32.totalorder %s457_s21, %s707_s1 }
   0x8   :  { %p463_p2 = pnand %p461_p1, %p458_p0 }
   0xa   :  { %466 = shalt.err (!%p463_p2)
}
   0xb   :  { %s467_s26 = scalar_lea.vmem %s32_s16, 256  ;;  %p472_p4 = scmp.lt.s32.totalorder %s32_s16, %s32_s16 }
   0xc   :  { %p468_p3 = scmp.ne.s32.totalorder %s32_s16, %s467_s26  ;;  %p473_p5 = scmp.lt.s32.totalorder %s467_s26, %s467_s26 }
   0xe   :  { %p474_p6 = por %p473_p5, %p472_p4 }
  0x10   :  { %p475_p7 = pnand %p474_p6, %p468_p3 }
  0x12   :  { %478 = shalt.err (!%p475_p7)
}
  0x13   :  { %s577_s27 = smov 128   ;;  %s578_s28 = smov 8  }
  0x14   :  { %37 = dma.hbm_to_vmem [thread:$0]  %s707_s1, 256, %s32_s16, [#allocation6], %s577_s27, %s577_s27, %s578_s28  }
  0x15   :  { %s479_s7 = scalar_lea.hbm %s706_s0, 2048 }
  0x16   :  { %p480_p8 = scmp.ne.s32.totalorder %s706_s0, %s479_s7  ;;  %p483_p9 = scmp.lt.u32.totalorder %s479_s7, %s706_s0 }
  0x18   :  { %p485_p10 = pnand %p483_p9, %p480_p8 }
  0x1a   :  { %488 = shalt.err (!%p485_p10)
}
  0x1b   :  { %s489_s12 = scalar_lea.vmem %s607_s18, 2048  ;;  %p494_p12 = scmp.lt.s32.totalorder %s607_s18, %s607_s18 }
  0x1c   :  { %p490_p11 = scmp.ne.s32.totalorder %s607_s18, %s489_s12  ;;  %p495_p13 = scmp.lt.s32.totalorder %s489_s12, %s489_s12 }
  0x1e   :  { %p496_p0 = por %p495_p13, %p494_p12 }
  0x20   :  { %p497_p1 = pnand %p496_p0, %p490_p11 }
  0x22   :  { %500 = shalt.err (!%p497_p1)
}
  0x23   :  { %25 = dma.hbm_to_vmem [thread:$0]  %s706_s0, 2048, %s607_s18, [#allocation3], %s577_s27, %s577_s27, %s578_s28  }
  0x24   :  { %s579_s14 = smov [#allocation7]   ;;  %s501_s19 = scalar_lea.hbm %s708_s2, 128 }
  0x25   :  { %s44_s15 = sshll.u32 %s579_s14, 4  ;;  %p502_p2 = scmp.ne.s32.totalorder %s708_s2, %s501_s19  ;;  %s45_s15 = int_to_ptr.vmem [resolvable:$true] %s44_s15 }
  0x26   :  { %p505_p3 = scmp.lt.u32.totalorder %s501_s19, %s708_s2 }
  0x28   :  { %p507_p4 = pnand %p505_p3, %p502_p2 }
  0x2a   :  { %510 = shalt.err (!%p507_p4)
}
  0x2b   :  { %s511_s24 = scalar_lea.vmem %s45_s15, 128  ;;  %p516_p6 = scmp.lt.s32.totalorder %s45_s15, %s45_s15 }
  0x2c   :  { %p512_p5 = scmp.ne.s32.totalorder %s45_s15, %s511_s24  ;;  %p517_p7 = scmp.lt.s32.totalorder %s511_s24, %s511_s24 }
  0x2e   :  { %p518_p8 = por %p517_p7, %p516_p6 }
  0x30   :  { %p519_p9 = pnand %p518_p8, %p512_p5 }
  0x32   :  { %522 = shalt.err (!%p519_p9)
}
  0x33   :  { %47 = dma.hbm_to_vmem [thread:$0]  %s708_s2, 128, %s45_s15, [#allocation6]  }
  0x34   :  { %567 = dma.done.wait [#allocation3], 2048  }
  0x35   :  { %568 = vsyncadd [#allocation3], 4294965248 }
  0x36   :  { %569 = dma.done.wait [#allocation6], 384  }
  0x37   :  { %570 = vsyncadd [#allocation6], 4294966912  ;;  %v96_v0 = vld [vmem:[#allocation5] sm:$0xff]  ;;  %v97_v1 = vld [vmem:[#allocation5 + $0x8] sm:$0xff]  ;;  %vm98_vm0 = vcmask 130048   ;;  %vm228_vm1 = vcmask 64512  }
  0x38   :  { %v57_v2 = vld [vmem:[#allocation2] ss:$2 sm:$0xff]  ;;  %v444_v3 = vpack.c.bf16 %v97_v1, %v96_v0  ;;  %v73_v4 = vld [vmem:[#allocation2 + $0x1] ss:$2 sm:$0xff]  ;;  %v59_v5 = vld [vmem:[#allocation2 + $0x10] ss:$2 sm:$0xff] }
  0x39   :  { %v75_v6 = vld [vmem:[#allocation2 + $0x11] ss:$2 sm:$0xff]  ;;  %v88_v7 = vadd.f32 %v73_v4, %v57_v2  ;;  %v61_v8 = vld [vmem:[#allocation2 + $0x20] ss:$2 sm:$0xff]  ;;  %v77_v9 = vld [vmem:[#allocation2 + $0x21] ss:$2 sm:$0xff] }
  0x3a   :  { %445 = vmatprep.subr.bf16.mxu0 %v444_v3  ;;  %v89_v10 = vadd.f32 %v75_v6, %v59_v5  ;;  %448 = vmatprep.subr.bf16.mxu1 %v444_v3  ;;  %v63_v11 = vld [vmem:[#allocation2 + $0x30] ss:$2 sm:$0xff]  ;;  %v79_v12 = vld [vmem:[#allocation2 + $0x31] ss:$2 sm:$0xff]  ;;  %v90_v13 = vadd.f32 %v77_v9, %v61_v8  ;;  %v65_v14 = vld [vmem:[#allocation2 + $0x40] ss:$2 sm:$0xff] }
  0x3b   :  { %447 = vmatpush3.bf16.msra.mxu0 %v444_v3  ;;  %424 = vmatprep.mubr.msk.f32.mxu0 %vm98_vm0, %v88_v7  ;;  %v69_v15 = vld [vmem:[#allocation2 + $0x60] ss:$2 sm:$0xff]  ;;  %v85_v16 = vld [vmem:[#allocation2 + $0x61] ss:$2 sm:$0xff]  ;;  %v71_v19 = vld [vmem:[#allocation2 + $0x70] ss:$2 sm:$0xff]  ;;  %v91_v22 = vadd.f32 %v79_v12, %v63_v11 }
  0x3c   :  { %449 = vmatpush3.bf16.msra.mxu1 %v444_v3  ;;  %v81_v17 = vld [vmem:[#allocation2 + $0x41] ss:$2 sm:$0xff]  ;;  %v94_v18 = vadd.f32 %v85_v16, %v69_v15  ;;  %v87_v20 = vld [vmem:[#allocation2 + $0x71] ss:$2 sm:$0xff]  ;;  %v67_v24 = vld [vmem:[#allocation2 + $0x50] ss:$2 sm:$0xff] }
  0x3d   :  { %v95_v21 = vadd.f32 %v87_v20, %v71_v19  ;;  %v92_v23 = vadd.f32 %v81_v17, %v65_v14  ;;  %v83_v25 = vld [vmem:[#allocation2 + $0x51] ss:$2 sm:$0xff]  ;;  %s580_s2 = smov [#allocation8]  }
  0x3e   :  { %425 = vmatmul.mubr.msk.f32.vlgmr.msra.gmra.mrb[0].mxu0 %vm98_vm0, %v89_v10  ;;  %433 = vmatprep.mubr.msk.f32.mxu1 %vm98_vm0, %v94_v18  ;;  %v93_v26 = vadd.f32 %v83_v25, %v67_v24  ;;  %v256_v27 = vld [vmem:[#allocation7] sm:$0xff]  ;;  %s364_s25 = sshll.u32 %s580_s2, 4  ;;  %s365_s25 = int_to_ptr.vmem [resolvable:$true] %s364_s25 }
  0x3f   :  { %427 = vmatprep.mubr.msk.f32.mxu0 %vm98_vm0, %v90_v13  ;;  %434 = vmatmul.mubr.msk.f32.vlgmr.msra.gmra.mrb[0].mxu1 %vm98_vm0, %v95_v21  ;;  %s523_s26 = scalar_lea.vmem %s365_s25, 1024  ;;  %p528_p11 = scmp.lt.s32.totalorder %s365_s25, %s365_s25 }
  0x40   :  { %436 = vmatprep.subr.mxu1 %v256_v27  ;;  %p524_p10 = scmp.ne.s32.totalorder %s365_s25, %s523_s26  ;;  %p529_p12 = scmp.lt.s32.totalorder %s523_s26, %s523_s26 }
  0x41   :  { %437 = vmatpush3.msra.mxu1 %v256_v27 }
  0x42   :  { %428 = vmatmul.mubr.msk.f32.gmra.mrb[2].mxu0 %vm98_vm0, %v91_v22  ;;  %p530_p13 = por %p529_p12, %p528_p11 }
  0x43   :  { %430 = vmatprep.mubr.msk.f32.mxu0 %vm98_vm0, %v92_v23 }
  0x44   :  { %p531_p0 = pnand %p530_p13, %p524_p10 }
  0x46   :  { %431 = vmatmul.mubr.msk.f32.gmra.mrb[4].mxu0 %vm98_vm0, %v93_v26 }
 0x111   :  { %v426_v28 = vpop.f32.mrb[0].mxu0 }
 0x112   :  { %230 = vst.msk [vmem:[#allocation8 + $0x8] sm:$0xff] %vm228_vm1, %v426_v28  ;;  %v189_v29 = vpop.f32.mrb[1].mxu0  ;;  %v435_v30 = vpop.f32.mrb[0].mxu1 }
 0x113   :  { %229 = vst.msk [vmem:[#allocation8] sm:$0xff] %vm228_vm1, %v189_v29  ;;  %236 = vst.msk [vmem:[#allocation8 + $0x38] sm:$0xff] %vm228_vm1, %v435_v30  ;;  %v219_v31 = vpop.f32.mrb[1].mxu1 }
 0x114   :  { %235 = vst.msk [vmem:[#allocation8 + $0x30] sm:$0xff] %vm228_vm1, %v219_v31 }
 0x115   :  { %v429_v32 = vpop.f32.mrb[2].mxu0 }
 0x116   :  { %232 = vst.msk [vmem:[#allocation8 + $0x18] sm:$0xff] %vm228_vm1, %v429_v32  ;;  %v199_v33 = vpop.f32.mrb[3].mxu0 }
 0x117   :  { %231 = vst.msk [vmem:[#allocation8 + $0x10] sm:$0xff] %vm228_vm1, %v199_v33 }
 0x119   :  { %v432_v34 = vpop.f32.mrb[4].mxu0 }
 0x11a   :  { %234 = vst.msk [vmem:[#allocation8 + $0x28] sm:$0xff] %vm228_vm1, %v432_v34  ;;  %v209_v35 = vpop.f32.mrb[5].mxu0  ;;  %v237_v36 = vld [vmem:[#allocation8] ss:$2 sm:$0xff]  ;;  %v245_v37 = vld [vmem:[#allocation8 + $0x1] ss:$2 sm:$0xff] }
 0x11b   :  { %233 = vst.msk [vmem:[#allocation8 + $0x20] sm:$0xff] %vm228_vm1, %v209_v35  ;;  %v252_v38 = vadd.f32 %v245_v37, %v237_v36  ;;  %v243_v42 = vld [vmem:[#allocation8 + $0x30] ss:$2 sm:$0xff]  ;;  %v251_v43 = vld [vmem:[#allocation8 + $0x31] ss:$2 sm:$0xff] }
 0x11c   :  { %v255_v46 = vadd.f32 %v251_v43, %v243_v42 }
 0x11d   :  { %438 = vmatprep.mubr.msk.f32.mxu1 %vm228_vm1, %v252_v38 }
 0x11e   :  { %v239_v39 = vld [vmem:[#allocation8 + $0x10] ss:$2 sm:$0xff]  ;;  %v247_v40 = vld [vmem:[#allocation8 + $0x11] ss:$2 sm:$0xff] }
 0x11f   :  { %v253_v41 = vadd.f32 %v247_v40, %v239_v39 }
 0x121   :  { %439 = vmatmul.mubr.msk.f32.vlgmr.msra.gmra.mrb[2].mxu1 %vm228_vm1, %v253_v41 }
 0x122   :  { %v241_v44 = vld [vmem:[#allocation8 + $0x20] ss:$2 sm:$0xff]  ;;  %v249_v45 = vld [vmem:[#allocation8 + $0x21] ss:$2 sm:$0xff] }
 0x123   :  { %v254_v47 = vadd.f32 %v249_v45, %v241_v44 }
 0x125   :  { %441 = vmatprep.mubr.msk.f32.mxu1 %vm228_vm1, %v254_v47 }
 0x126   :  { %442 = vmatmul.mubr.msk.f32.gmra.mrb[4].mxu1 %vm228_vm1, %v255_v46 }
 0x127   :  { %534 = shalt.err (!%p531_p0)
}
 0x128   :  { %s535_s5 = scalar_lea.hbm %s709_s3, 1024 }
 0x129   :  { %p536_p1 = scmp.ne.s32.totalorder %s709_s3, %s535_s5  ;;  %p539_p2 = scmp.lt.u32.totalorder %s535_s5, %s709_s3 }
 0x12b   :  { %p541_p3 = pnand %p539_p2, %p536_p1 }
 0x12d   :  { %544 = shalt.err (!%p541_p3)
}
 0x12e   :  { %370 = dma.vmem_to_hbm [thread:$0]  %s365_s25, 1024, %s709_s3, [#allocation4], %s577_s27, %s577_s27, %s578_s28   ;;  %vm354_vm2 = vcmask 31744  }
 0x12f   :  { %s581_s12 = smov [#allocation9]  }
 0x130   :  { %s376_s1 = sshll.u32 %s581_s12, 4  ;;  %s377_s1 = int_to_ptr.vmem [resolvable:$true] %s376_s1 }
 0x131   :  { %s545_s13 = scalar_lea.vmem %s377_s1, 512  ;;  %p550_p5 = scmp.lt.s32.totalorder %s377_s1, %s377_s1 }
 0x132   :  { %p546_p4 = scmp.ne.s32.totalorder %s377_s1, %s545_s13  ;;  %p551_p6 = scmp.lt.s32.totalorder %s545_s13, %s545_s13 }
 0x134   :  { %p552_p7 = por %p551_p6, %p550_p5 }
 0x136   :  { %p553_p8 = pnand %p552_p7, %p546_p4 }
 0x1f4   :  { %v440_v48 = vpop.f32.mrb[2].mxu1 }
 0x1f5   :  { %356 = vst.msk [vmem:[#allocation9 + $0x8] sm:$0xff] %vm354_vm2, %v440_v48  ;;  %v335_v49 = vpop.f32.mrb[3].mxu1 }
 0x1f6   :  { %355 = vst.msk [vmem:[#allocation9] sm:$0xff] %vm354_vm2, %v335_v49 }
 0x1f9   :  { %v443_v50 = vpop.f32.mrb[4].mxu1 }
 0x1fa   :  { %358 = vst.msk [vmem:[#allocation9 + $0x18] sm:$0xff] %vm354_vm2, %v443_v50  ;;  %v345_v51 = vpop.f32.mrb[5].mxu1 }
 0x1fb   :  { %357 = vst.msk [vmem:[#allocation9 + $0x10] sm:$0xff] %vm354_vm2, %v345_v51 }
 0x1fc   :  { %556 = shalt.err (!%p553_p8)
}
 0x1fd   :  { %s557_s15 = scalar_lea.hbm %s710_s4, 512 }
 0x1fe   :  { %p558_p9 = scmp.ne.s32.totalorder %s710_s4, %s557_s15  ;;  %p561_p10 = scmp.lt.u32.totalorder %s557_s15, %s710_s4 }
 0x200   :  { %p563_p11 = pnand %p561_p10, %p558_p9 }
 0x202   :  { %566 = shalt.err (!%p563_p11)
}
 0x203   :  { %382 = dma.vmem_to_hbm [thread:$0]  %s377_s1, 512, %s710_s4, [#allocation10], %s577_s27, %s577_s27, %s578_s28  }
 0x204   :  { %571 = dma.done.wait [#allocation4], 1024  }
 0x205   :  { %572 = vsyncadd [#allocation4], 4294966272 }
 0x206   :  { %573 = dma.done.wait [#allocation10], 512  }
 0x207   :  { %574 = vsyncadd [#allocation10], 4294966784 }
 0x208   :  { %389 = vsyncpa [#allocation3], 1 }
 0x209   :  { %390 = vsyncpa [#allocation6], 1 }
 0x20a   :  { %391 = vsyncpa [#allocation4], 1 }
 0x20b   :  { %392 = vsyncpa [#allocation10], 1 }

</bundles_post_ra>
